<compile_context>
chip_gen: v5e
topology: v5e:2x2
jax: 0.10.0
libtpu: 0.0.40
codegen_flags: <defaults>
</compile_context>

<pallas_src>
import functools

import jax
import jax.numpy as jnp
from jax.experimental import pallas as pl
from jax.experimental.pallas import tpu as pltpu

LANES = 128
SUBLANES = 8
_LOG2 = 0.6931471805599453


def _logcosh_partial_kernel(y_ref, yhat_ref, out_ref, acc_ref, *,
                            block_rows, steps, n_valid, need_mask):
    k = pl.program_id(1)

    @pl.when(k == 0)
    def _():
        acc_ref[...] = jnp.zeros_like(acc_ref)

    diff = y_ref[...] - yhat_ref[...] + jnp.float32(1e-12)
    ad = jnp.abs(diff)
    # Numerically stable log(cosh(x)): |x| + log(1 + exp(-2|x|)) - log(2).
    vals = ad + jnp.log(1.0 + jnp.exp(jnp.float32(-2.0) * ad)) - jnp.float32(_LOG2)

    if need_mask:
        # Exact masking of padded elements (static n_valid; assumes < 2^31 elems).
        base_row = (pl.program_id(0) * steps + k) * block_rows
        row_ids = jax.lax.broadcasted_iota(jnp.int32, (block_rows, LANES), 0)
        col_ids = jax.lax.broadcasted_iota(jnp.int32, (block_rows, LANES), 1)
        elem_ids = (base_row + row_ids) * LANES + col_ids
        vals = jnp.where(elem_ids < n_valid, vals, jnp.float32(0.0))

    # Keep 8x128 partial sums in a vreg-shaped accumulator: only VPU adds in
    # the hot loop, no per-step cross-lane reduction.
    acc_ref[...] += vals.reshape(block_rows // SUBLANES, SUBLANES, LANES).sum(axis=0)

    @pl.when(k == pl.num_programs(1) - 1)
    def _():
        out_ref[...] = acc_ref[...]


def log_cosh_loss(y, y_hat, *, block_rows=1024, n_splits=2):
    """mean(log(cosh(y - y_hat + 1e-12))) * 2.0, reduction done in Pallas."""
    assert y.shape == y_hat.shape
    n = int(y.size)
    assert n > 0

    yf = jnp.ravel(y).astype(jnp.float32)
    yhf = jnp.ravel(y_hat).astype(jnp.float32)

    # Clamp the tile to the data size; keep row count a multiple of 8 sublanes.
    rows_needed = -(-n // LANES)
    block_rows = max(
        SUBLANES,
        min(block_rows, ((rows_needed + SUBLANES - 1) // SUBLANES) * SUBLANES),
    )
    tile = block_rows * LANES

    # Only split across a parallel grid axis (-> both TCs on megacore parts)
    # when each split gets at least one full tile of work.
    if n < n_splits * tile:
        n_splits = 1

    chunk = tile * n_splits
    n_pad = ((n + chunk - 1) // chunk) * chunk
    pad = n_pad - n
    if pad:  # zero-copy in the aligned (common) case
        yf = jnp.pad(yf, (0, pad))
        yhf = jnp.pad(yhf, (0, pad))

    rows = n_pad // LANES
    y2 = yf.reshape(rows, LANES)
    yh2 = yhf.reshape(rows, LANES)
    steps = rows // (block_rows * n_splits)

    kernel = functools.partial(
        _logcosh_partial_kernel,
        block_rows=block_rows,
        steps=steps,
        n_valid=n,
        need_mask=(pad > 0),
    )

    partials = pl.pallas_call(
        kernel,
        out_shape=jax.ShapeDtypeStruct((SUBLANES * n_splits, LANES), jnp.float32),
        grid_spec=pltpu.PrefetchScalarGridSpec(
            num_scalar_prefetch=0,
            grid=(n_splits, steps),
            in_specs=[
                pl.BlockSpec((block_rows, LANES), lambda i, k: (i * steps + k, 0)),
                pl.BlockSpec((block_rows, LANES), lambda i, k: (i * steps + k, 0)),
            ],
            out_specs=pl.BlockSpec((SUBLANES, LANES), lambda i, k: (i, 0)),
            scratch_shapes=[pltpu.VMEM((SUBLANES, LANES), jnp.float32)],
        ),
        compiler_params=pltpu.CompilerParams(
            dimension_semantics=("parallel", "arbitrary"),
        ),
    )(y2, yh2)

    total = jnp.sum(partials)  # tiny final cross-lane reduction in XLA
    return (total / jnp.float32(n)) * jnp.float32(2.0)


if __name__ == "__main__":
    key = jax.random.PRNGKey(0)
    k1, k2 = jax.random.split(key)
    # Small shape consistent with "blendshape values" style inputs: (2, 4, 16, 16)
    y = jax.random.normal(k1, (2, 4, 16, 16), dtype=jnp.float32)
    y_hat = jax.random.normal(k2, (2, 4, 16, 16), dtype=jnp.float32)

    loss = log_cosh_loss(y, y_hat)
    jax.block_until_ready(loss)
    ref = jnp.mean(jnp.log(jnp.cosh(y - y_hat + 1e-12))) * 2.0
    assert jnp.allclose(loss, ref, atol=1e-5, rtol=1e-5), (loss, ref)

    # Also exercise the padded / multi-step / split path.
    k3, k4 = jax.random.split(k2)
    y_b = jax.random.normal(k3, (3, 5, 17, 9), dtype=jnp.float32)
    y_hat_b = jax.random.normal(k4, (3, 5, 17, 9), dtype=jnp.float32)
    loss_b = log_cosh_loss(y_b, y_hat_b, block_rows=8)
    jax.block_until_ready(loss_b)
    ref_b = jnp.mean(jnp.log(jnp.cosh(y_b - y_hat_b + 1e-12))) * 2.0
    assert jnp.allclose(loss_b, ref_b, atol=1e-5, rtol=1e-5), (loss_b, ref_b)

    print("KERNEL_OK")
</pallas_src>

<mosaic_0001>
module attributes {stable_mosaic.version = 11 : i64} {
  func.func @_logcosh_partial_kernel(%arg0: i32, %arg1: i32, %arg2: memref<16x128xf32, #tpu.memory_space<vmem>>, %arg3: memref<16x128xf32, #tpu.memory_space<vmem>>, %arg4: memref<8x128xf32, #tpu.memory_space<vmem>>, %arg5: memref<8x128xf32, #tpu.memory_space<vmem>>) attributes {dimension_semantics = [#tpu.dimension_semantics<parallel>, #tpu.dimension_semantics<arbitrary>], iteration_bounds = array<i64: 1, 1>, scalar_prefetch = 0 : i64, scratch_operands = 1 : i64, tpu.core_type = #tpu.core_type<tc>, window_params = [{transform_indices = @transform_0, window_bounds = array<i64: 16, 128>}, {transform_indices = @transform_1, window_bounds = array<i64: 16, 128>}, {transform_indices = @transform_2, window_bounds = array<i64: 8, 128>}]} {
    %c0_i32 = arith.constant 0 : i32
    %0 = arith.cmpi eq, %arg1, %c0_i32 : i32
    %1 = arith.extui %0 : i1 to i32
    %c0_i32_0 = arith.constant 0 : i32
    %2 = arith.cmpi ne, %1, %c0_i32_0 : i32
    scf.if %2 {
      %cst_14 = arith.constant 0.000000e+00 : f32
      %26 = vector.broadcast %cst_14 : f32 to vector<8x128xf32>
      %c0_15 = arith.constant 0 : index
      %c0_16 = arith.constant 0 : index
      %27 = vector.load %arg5[%c0_15, %c0_16] : memref<8x128xf32, #tpu.memory_space<vmem>>, vector<8x128xf32>
      tpu.vector_store %arg5[%c0_15, %c0_16], %26 {strides = array<i32>} : memref<8x128xf32, #tpu.memory_space<vmem>>, vector<8x128xf32>,
    } else {
    }
    %c0 = arith.constant 0 : index
    %c0_1 = arith.constant 0 : index
    %3 = vector.load %arg2[%c0, %c0_1] : memref<16x128xf32, #tpu.memory_space<vmem>>, vector<16x128xf32>
    %c0_2 = arith.constant 0 : index
    %c0_3 = arith.constant 0 : index
    %4 = vector.load %arg3[%c0_2, %c0_3] : memref<16x128xf32, #tpu.memory_space<vmem>>, vector<16x128xf32>
    %5 = arith.subf %3, %4 : vector<16x128xf32>
    %cst = arith.constant 9.99999996E-13 : f32
    %6 = vector.broadcast %cst : f32 to vector<16x128xf32>
    %7 = arith.addf %5, %6 : vector<16x128xf32>
    %8 = math.absf %7 : vector<16x128xf32>
    %cst_4 = arith.constant -2.000000e+00 : f32
    %9 = vector.broadcast %cst_4 : f32 to vector<16x128xf32>
    %10 = arith.mulf %9, %8 : vector<16x128xf32>
    %11 = math.exp %10 : vector<16x128xf32>
    %cst_5 = arith.constant 1.000000e+00 : f32
    %12 = vector.broadcast %cst_5 : f32 to vector<16x128xf32>
    %13 = arith.addf %12, %11 : vector<16x128xf32>
    %14 = math.log %13 : vector<16x128xf32>
    %15 = arith.addf %8, %14 : vector<16x128xf32>
    %cst_6 = arith.constant 0.693147182 : f32
    %16 = vector.broadcast %cst_6 : f32 to vector<16x128xf32>
    %17 = arith.subf %15, %16 : vector<16x128xf32>
    %c0_7 = arith.constant 0 : index
    %c0_8 = arith.constant 0 : index
    %18 = vector.load %arg5[%c0_7, %c0_8] : memref<8x128xf32, #tpu.memory_space<vmem>>, vector<8x128xf32>
    %19 = vector.shape_cast %17 : vector<16x128xf32> to vector<2x8x128xf32>
    %cst_9 = arith.constant dense<0.000000e+00> : vector<8x128xf32>
    %20 = vector.multi_reduction <add>, %19, %cst_9 [0] : vector<2x8x128xf32> to vector<8x128xf32>
    %21 = arith.addf %18, %20 : vector<8x128xf32>
    %c0_10 = arith.constant 0 : index
    %c0_11 = arith.constant 0 : index
    %22 = vector.load %arg5[%c0_10, %c0_11] : memref<8x128xf32, #tpu.memory_space<vmem>>, vector<8x128xf32>
    tpu.vector_store %arg5[%c0_10, %c0_11], %21 {strides = array<i32>} : memref<8x128xf32, #tpu.memory_space<vmem>>, vector<8x128xf32>,
    %c0_i32_12 = arith.constant 0 : i32
    %23 = arith.cmpi eq, %arg1, %c0_i32_12 : i32
    %24 = arith.extui %23 : i1 to i32
    %c0_i32_13 = arith.constant 0 : i32
    %25 = arith.cmpi ne, %24, %c0_i32_13 : i32
    scf.if %25 {
      %c0_14 = arith.constant 0 : index
      %c0_15 = arith.constant 0 : index
      %26 = vector.load %arg5[%c0_14, %c0_15] : memref<8x128xf32, #tpu.memory_space<vmem>>, vector<8x128xf32>
      %c0_16 = arith.constant 0 : index
      %c0_17 = arith.constant 0 : index
      %27 = vector.load %arg4[%c0_16, %c0_17] : memref<8x128xf32, #tpu.memory_space<vmem>>, vector<8x128xf32>
      tpu.vector_store %arg4[%c0_16, %c0_17], %26 {strides = array<i32>} : memref<8x128xf32, #tpu.memory_space<vmem>>, vector<8x128xf32>,
    } else {
    }
    return
  }
  func.func @transform_0(%arg0: i32, %arg1: i32) -> (i32, i32) {
    %c1_i32 = arith.constant 1 : i32
    %0 = arith.muli %arg0, %c1_i32 : i32
    %1 = arith.addi %0, %arg1 : i32
    %c0_i32 = arith.constant 0 : i32
    %c0_i32_0 = arith.constant 0 : i32
    return %1, %c0_i32 : i32, i32
  }
  func.func @transform_1(%arg0: i32, %arg1: i32) -> (i32, i32) {
    %c1_i32 = arith.constant 1 : i32
    %0 = arith.muli %arg0, %c1_i32 : i32
    %1 = arith.addi %0, %arg1 : i32
    %c0_i32 = arith.constant 0 : i32
    %c0_i32_0 = arith.constant 0 : i32
    return %1, %c0_i32 : i32, i32
  }
  func.func @transform_2(%arg0: i32, %arg1: i32) -> (i32, i32) {
    %c0_i32 = arith.constant 0 : i32
    %c0_i32_0 = arith.constant 0 : i32
    return %arg0, %c0_i32 : i32, i32
  }
}

</mosaic_0001>

<bundles_post_ra>
// kernel: tpu_custom_call.1
= control target key start
LH: loop header
LB: loop body
LE: loop exit
PB: predicated region body
PF: predicated region fallthrough
CT: control target
= control target key end

     0   :  { %7 = vsyncpa [#allocation4], 0  ;;  %s236_s0 = inlined_call_operand.hbm [shape: f32[16,128], index: 0, kind: input, shape index: {}]   ;;  %s237_s1 = inlined_call_operand.hbm [shape: f32[16,128], index: 1, kind: input, shape index: {}]   ;;  %s238_s2 = inlined_call_operand.hbm [shape: f32[8,128], index: 2, kind: output, shape index: {}]  }
   0x1   :  { %8 = vsyncpa [#allocation7], 0 }
   0x2   :  { %9 = vsyncpa [#allocation5], 0  ;;  %s18_s11 = sshll.u32 %s236_s0, 4  ;;  %s207_s12 = smov [#allocation3]   ;;  %s19_s11 = int_to_ptr.hbm [resolvable:$true] %s18_s11 }
   0x3   :  { %s20_s13 = sshll.u32 %s207_s12, 4  ;;  %s35_s16 = sshll.u32 %s237_s1, 4  ;;  %s21_s13 = int_to_ptr.vmem [resolvable:$true] %s20_s13  ;;  %s36_s16 = int_to_ptr.hbm [resolvable:$true] %s35_s16 }
   0x4   :  { %s208_s17 = smov 128   ;;  %s209_s18 = smov 8  }
   0x5   :  { %26 = dma.hbm_to_vmem [thread:$0]  %s19_s11, 256, %s21_s13, [#allocation4], %s208_s17, %s208_s17, %s209_s18  }
   0x6   :  { %s210_s19 = smov [#allocation6]  }
   0x7   :  { %s37_s20 = sshll.u32 %s210_s19, 4  ;;  %s38_s20 = int_to_ptr.vmem [resolvable:$true] %s37_s20 }
   0x8   :  { %43 = dma.hbm_to_vmem [thread:$0]  %s36_s16, 256, %s38_s20, [#allocation7], %s208_s17, %s208_s17, %s209_s18  }
   0x9   :  { %201 = dma.done.wait [#allocation4], 256  }
   0xa   :  { %202 = vsyncadd [#allocation4], 4294967040 }
   0xb   :  { %203 = dma.done.wait [#allocation7], 256  }
   0xc   :  { %204 = vsyncadd [#allocation7], 4294967040  ;;  %v61_v0 = vld [vmem:[#allocation3] sm:$0xff]  ;;  %v62_v1 = vld [vmem:[#allocation3 + $0x8] sm:$0xff]  ;;  %s211_s0 = smov [#allocation8]   ;;  %s103_s23 = sshll.u32 %s238_s2, 4  ;;  %s104_s23 = int_to_ptr.hbm [resolvable:$true] %s103_s23 }
   0xd   :  { %v63_v2 = vld [vmem:[#allocation6] sm:$0xff]  ;;  %v64_v3 = vld [vmem:[#allocation6 + $0x8] sm:$0xff]  ;;  %s101_s1 = sshll.u32 %s211_s0, 4  ;;  %s102_s1 = int_to_ptr.vmem [resolvable:$true] %s101_s1 }
   0xe   :  { %v65_v4 = vsub.f32 %v61_v0, %v63_v2  ;;  %v66_v5 = vsub.f32 %v62_v1, %v64_v3 }
  0x10   :  { %v67_v6 = vadd.f32 1e-12, %v65_v4  ;;  %v68_v7 = vadd.f32 1e-12, %v66_v5 }
  0x12   :  { %v69_v8 = vand.u32 2147483647, %v67_v6  ;;  %v70_v9 = vand.u32 2147483647, %v68_v7 }
  0x14   :  { %v71_v10 = vmul.f32 -2.0, %v69_v8  ;;  %v72_v11 = vmul.f32 -2.0, %v70_v9 }
  0x16   :  { %v73_v12 = vmul.f32 1.442695, %v71_v10  ;;  %v75_v13 = vmul.f32 1.442695, %v72_v11 }
  0x18   :  { %121 = vpow2.f32 %v73_v12 }
  0x19   :  { %123 = vpow2.f32 %v75_v13 }
  0x1e   :  { %v122_v14 = vpop.eup %121 }
  0x1f   :  { %v124_v15 = vpop.eup %123  ;;  %v77_v16 = vadd.f32 1.0, %v122_v14 }
  0x20   :  { %v78_v17 = vadd.f32 1.0, %v124_v15 }
  0x21   :  { %125 = vlog2.f32 %v77_v16 }
  0x22   :  { %127 = vlog2.f32 %v78_v17 }
  0x27   :  { %v126_v18 = vpop.eup %125 }
  0x28   :  { %v128_v19 = vpop.eup %127  ;;  %v80_v20 = vmul.f32 0.6931472, %v126_v18 }
  0x29   :  { %v82_v21 = vmul.f32 0.6931472, %v128_v19 }
  0x2a   :  { %v83_v22 = vadd.f32 %v80_v20, %v69_v8 }
  0x2b   :  { %v84_v23 = vadd.f32 %v82_v21, %v70_v9 }
  0x2c   :  { %v114_v24 = vadd.f32 -0.6931472, %v83_v22 }
  0x2d   :  { %v115_v25 = vadd.f32 -0.6931472, %v84_v23 }
  0x2f   :  { %v88_v26 = vadd.f32 %v115_v25, %v114_v24 }
  0x31   :  { %95 = vst [vmem:[#allocation8] sm:$0xff] %v88_v26 }
  0x32   :  { %106 = dma.vmem_to_hbm [thread:$0]  %s102_s1, 128, %s104_s23, [#allocation5]  }
  0x33   :  { %205 = dma.done.wait [#allocation5], 128  }
  0x34   :  { %206 = vsyncadd [#allocation5], 4294967168 }
  0x35   :  { %111 = vsyncpa [#allocation4], 1 }
  0x36   :  { %112 = vsyncpa [#allocation7], 1 }
  0x37   :  { %113 = vsyncpa [#allocation5], 1 }

</bundles_post_ra>
